<compile_context>
chip_gen: v7x
topology: tpu7x:2x2x1
jax: 0.10.0
libtpu: 0.0.40
codegen_flags: <defaults>
</compile_context>

<pallas_src>
import math

import jax
import jax.numpy as jnp
from jax.experimental import pallas as pl
from jax.experimental.pallas import tpu as pltpu


LANE = 128


def _round_up(x, m=LANE):
    return ((x + m - 1) // m) * m


# -----------------------------------------------------------------------------
# Fused whole-model Pallas kernel
# -----------------------------------------------------------------------------

def make_kernel(num_layers, R, a_pad):
    """kernel(x_slab, w_slab, b_slab, out).

    Weight-slab column layout (all blocks lane-aligned, width R=128*k):
        [0        : L*R      ]  Wd_all  (gate weights, rows [S:S+D])
        [L*R      : (L+1)*R  ]  Ws_0    (rows [0:S])
        [(L+j)*R  : (L+j+1)*R]  Ws_j    (rows [0:h_{j-1}]),  j = 1..L-1
        [2*L*R    : 2*L*R+a_pad]  Wo    (rows [0:h_{L-1}])
    Bias slab has the same column layout (kept f32).
    """
    L = num_layers

    def kernel(x_ref, w_ref, b_ref, o_ref):
        x = x_ref[...]                                   # (TB, R) bf16

        # Fused MXU pass: gates for ALL layers + layer-0 pre-activation.
        width0 = (L + 1) * R
        y = jnp.dot(x, w_ref[:, :width0],
                    preferred_element_type=jnp.float32) + b_ref[:, :width0]
        gates = jax.nn.sigmoid(y[:, :L * R])             # (TB, L*R) f32
        state = jnp.maximum(y[:, L * R:width0], 0.0) * gates[:, :R]   # layer 0

        # Remaining hidden layers: state-path matmul only, gate is precomputed.
        for j in range(1, L):                            # static loop (LLO visibility)
            col = (L + j) * R
            yj = jnp.dot(state.astype(w_ref.dtype), w_ref[:, col:col + R],
                         preferred_element_type=jnp.float32) + b_ref[:, col:col + R]
            state = jnp.maximum(yj, 0.0) * gates[:, j * R:(j + 1) * R]

        # Output linear (lane-dense, a_pad multiple of 128).
        col = 2 * L * R
        out = jnp.dot(state.astype(w_ref.dtype), w_ref[:, col:col + a_pad],
                      preferred_element_type=jnp.float32) + b_ref[:, col:col + a_pad]
        o_ref[...] = out

    return kernel


# -----------------------------------------------------------------------------
# Parameter init (mirrors nn.Linear default) + packing into one slab
# -----------------------------------------------------------------------------

def init_upsd_params(key, state_size, desires_size, action_size, hidden_sizes):
    """Deterministic init mirroring nn.Linear default: U(-1/sqrt(fan_in), +)."""
    sizes = [state_size] + list(hidden_sizes)
    params = {"state_layers": [], "desires_layers": []}

    def lin_init(key, fan_in, fan_out):
        kw, kb = jax.random.split(key)
        bound = 1.0 / math.sqrt(fan_in)
        w = jax.random.uniform(kw, (fan_in, fan_out), jnp.float32, -bound, bound)
        b = jax.random.uniform(kb, (1, fan_out), jnp.float32, -bound, bound)
        return w, b

    for j in range(len(sizes) - 1):
        key, k1, k2 = jax.random.split(key, 3)
        params["state_layers"].append(lin_init(k1, sizes[j], sizes[j + 1]))
        params["desires_layers"].append(lin_init(k2, desires_size, sizes[j + 1]))

    key, ko = jax.random.split(key)
    params["output_fc"] = lin_init(ko, sizes[-1], action_size)
    return params


def pack_params(params, state_size, desires_size, action_size, hidden_sizes):
    """Pack all weights into one bf16 slab (R rows) and one f32 bias slab.

    Zero padding keeps padded lanes exactly 0 through every layer:
    relu(0 + 0) * sigmoid(anything) == 0, and padded weight rows are 0.
    """
    L = len(hidden_sizes)
    sizes = [state_size] + list(hidden_sizes)
    S, D = state_size, desires_size
    R = max(_round_up(S + D), *[_round_up(h) for h in hidden_sizes])
    a_pad = _round_up(action_size)

    total_cols = 2 * L * R + a_pad
    w = jnp.zeros((R, total_cols), jnp.float32)
    b = jnp.zeros((1, total_cols), jnp.float32)

    # Gate (desires-path) weights for all layers: rows [S:S+D].
    for j in range(L):
        wd, bd = params["desires_layers"][j]
        h = hidden_sizes[j]
        w = w.at[S:S + D, j * R:j * R + h].set(wd)
        b = b.at[:, j * R:j * R + h].set(bd)

    # State-path weights: layer j uses rows [0:fan_in_j].
    for j in range(L):
        ws, bs = params["state_layers"][j]
        fan_in, h = sizes[j], hidden_sizes[j]
        col = (L + j) * R
        w = w.at[:fan_in, col:col + h].set(ws)
        b = b.at[:, col:col + h].set(bs)

    # Output linear.
    wo, bo = params["output_fc"]
    col = 2 * L * R
    w = w.at[:hidden_sizes[-1], col:col + action_size].set(wo)
    b = b.at[:, col:col + action_size].set(bo)

    return {
        "w": w.astype(jnp.bfloat16),   # MXU-native operand dtype
        "b": b,                        # biases stay f32 (added post-accumulate)
        "R": R, "a_pad": a_pad, "L": L,
        "state_size": state_size, "desires_size": desires_size,
        "action_size": action_size,
    }


# -----------------------------------------------------------------------------
# Forward (single pallas_call) + matched-precision pure-JAX reference
# -----------------------------------------------------------------------------

def upsd_forward(packed, state, desires_list):
    # concat desires exactly like torch.cat(desires, dim=1)
    if len(desires_list) == 1:
        desires = desires_list[0]
    else:
        desires = jnp.concatenate(desires_list, axis=1)

    B = state.shape[0]
    R, a_pad, L = packed["R"], packed["a_pad"], packed["L"]
    S, D = packed["state_size"], packed["desires_size"]

    # One 128*k-lane input slab: [state | desires | 0...]; single concat+pad+cast.
    x = jnp.concatenate([state, desires], axis=1)
    Bp = _round_up(B, 8)
    TB = Bp if Bp <= 256 else 256
    Bp = _round_up(Bp, TB)
    x = jnp.pad(x, ((0, Bp - B), (0, R - (S + D)))).astype(jnp.bfloat16)

    out_pad = pl.pallas_call(
        make_kernel(L, R, a_pad),
        out_shape=jax.ShapeDtypeStruct((Bp, a_pad), jnp.float32),
        grid=(Bp // TB,),
        in_specs=[
            pl.BlockSpec((TB, R), lambda i: (i, 0)),
            # Constant index_map: weight/bias slabs stay VMEM-resident across
            # batch tiles (single DMA each).
            pl.BlockSpec(packed["w"].shape, lambda i: (0, 0)),
            pl.BlockSpec(packed["b"].shape, lambda i: (0, 0)),
        ],
        out_specs=pl.BlockSpec((TB, a_pad), lambda i: (i, 0)),
        compiler_params=pltpu.CompilerParams(
            dimension_semantics=("parallel",),
            vmem_limit_bytes=16 << 20,
        ),
    )(x, packed["w"], packed["b"])

    # Slice away batch / lane padding of the output.
    return out_pad[:B, :packed["action_size"]]


def upsd_forward_ref(params, state, desires_list, dtype=jnp.float32):
    """Pure-JAX reference; `dtype` sets matmul operand precision (match kernel)."""
    if len(desires_list) == 1:
        desires = desires_list[0]
    else:
        desires = jnp.concatenate(desires_list, axis=1)
    s = state.astype(dtype)
    d = desires.astype(dtype)
    for (ws, bs), (wd, bd) in zip(params["state_layers"], params["desires_layers"]):
        ys = jnp.dot(s, ws.astype(dtype), preferred_element_type=jnp.float32) + bs
        yd = jnp.dot(d, wd.astype(dtype), preferred_element_type=jnp.float32) + bd
        s = (jnp.maximum(ys, 0.0) * jax.nn.sigmoid(yd)).astype(dtype)
    wo, bo = params["output_fc"]
    return jnp.dot(s, wo.astype(dtype), preferred_element_type=jnp.float32) + bo


# -----------------------------------------------------------------------------
# Main
# -----------------------------------------------------------------------------

if __name__ == "__main__":
    # Small shapes consistent with the module.
    batch = 8
    state_size = 32
    desires_size = 16          # two desire tensors of width 8, concatenated
    action_size = 8
    hidden_sizes = [64, 64]

    key = jax.random.PRNGKey(0)
    kp, ks, kd1, kd2 = jax.random.split(key, 4)

    params = init_upsd_params(kp, state_size, desires_size, action_size, hidden_sizes)
    packed = pack_params(params, state_size, desires_size, action_size, hidden_sizes)

    state = jax.random.normal(ks, (batch, state_size), jnp.float32)
    desires_list = [
        jax.random.normal(kd1, (batch, desires_size // 2), jnp.float32),
        jax.random.normal(kd2, (batch, desires_size // 2), jnp.float32),
    ]

    out = jax.block_until_ready(upsd_forward(packed, state, desires_list))

    # Matched-precision reference (bf16 matmul operands, f32 accumulate).
    ref = upsd_forward_ref(params, state, desires_list, dtype=jnp.bfloat16)
    assert out.shape == (batch, action_size)
    assert jnp.allclose(out, ref, atol=1e-3, rtol=1e-3), "mismatch vs reference"

    print("KERNEL_OK")
</pallas_src>

<mosaic_0001>
module attributes {stable_mosaic.version = 11 : i64} {
  func.func @kernel(%arg0: i32, %arg1: memref<8x128xbf16, #tpu.memory_space<vmem>>, %arg2: memref<128x640xbf16, #tpu.memory_space<vmem>>, %arg3: memref<1x640xf32, #tpu.memory_space<vmem>>, %arg4: memref<8x128xf32, #tpu.memory_space<vmem>>) attributes {dimension_semantics = [#tpu.dimension_semantics<parallel>], iteration_bounds = array<i64: 1>, scalar_prefetch = 0 : i64, scratch_operands = 0 : i64, tpu.core_type = #tpu.core_type<tc>, window_params = [{transform_indices = @transform_0, window_bounds = array<i64: 8, 128>}, {pipeline_mode = #tpu.pipeline_mode<synchronous>, transform_indices = @transform_1, window_bounds = array<i64: 128, 640>}, {pipeline_mode = #tpu.pipeline_mode<synchronous>, transform_indices = @transform_2, window_bounds = array<i64: 1, 640>}, {transform_indices = @transform_3, window_bounds = array<i64: 8, 128>}]} {
    %c0 = arith.constant 0 : index
    %c0_0 = arith.constant 0 : index
    %0 = vector.load %arg1[%c0, %c0_0] : memref<8x128xbf16, #tpu.memory_space<vmem>>, vector<8x128xbf16>
    %c0_1 = arith.constant 0 : index
    %c0_2 = arith.constant 0 : index
    %1 = vector.load %arg2[%c0_1, %c0_2] : memref<128x640xbf16, #tpu.memory_space<vmem>>, vector<128x384xbf16>
    %cst = arith.constant dense<0.000000e+00> : vector<8x384xf32>
    %2 = tpu.matmul %0, %1, %cst {dimension_numbers = #tpu.dot_dimension_numbers<[1], [0], [0], [1], [0, 0, 1, 1], [], []>} : vector<8x128xbf16>, vector<128x384xbf16>, vector<8x384xf32> -> vector<8x384xf32>
    %c0_3 = arith.constant 0 : index
    %c0_4 = arith.constant 0 : index
    %3 = vector.load %arg3[%c0_3, %c0_4] : memref<1x640xf32, #tpu.memory_space<vmem>>, vector<1x384xf32>
    %4 = vector.broadcast %3 : vector<1x384xf32> to vector<8x384xf32>
    %5 = arith.addf %2, %4 : vector<8x384xf32>
    %6 = vector.extract_strided_slice %5 {offsets = [0, 0], sizes = [8, 256], strides = [1, 1]} : vector<8x384xf32> to vector<8x256xf32>
    %7 = arith.negf %6 : vector<8x256xf32>
    %8 = math.exp %7 : vector<8x256xf32>
    %cst_5 = arith.constant 1.000000e+00 : f32
    %9 = vector.broadcast %cst_5 : f32 to vector<8x256xf32>
    %10 = arith.addf %9, %8 : vector<8x256xf32>
    %11 = arith.divf %9, %10 : vector<8x256xf32>
    %12 = vector.extract_strided_slice %5 {offsets = [0, 256], sizes = [8, 128], strides = [1, 1]} : vector<8x384xf32> to vector<8x128xf32>
    %cst_6 = arith.constant 0.000000e+00 : f32
    %13 = vector.broadcast %cst_6 : f32 to vector<8x128xf32>
    %14 = arith.maximumf %12, %13 : vector<8x128xf32>
    %15 = vector.extract_strided_slice %11 {offsets = [0, 0], sizes = [8, 128], strides = [1, 1]} : vector<8x256xf32> to vector<8x128xf32>
    %16 = arith.mulf %14, %15 : vector<8x128xf32>
    %17 = arith.truncf %16 : vector<8x128xf32> to vector<8x128xbf16>
    %c0_7 = arith.constant 0 : index
    %c384 = arith.constant 384 : index
    %18 = vector.load %arg2[%c0_7, %c384] : memref<128x640xbf16, #tpu.memory_space<vmem>>, vector<128x128xbf16>
    %cst_8 = arith.constant dense<0.000000e+00> : vector<8x128xf32>
    %19 = tpu.matmul %17, %18, %cst_8 {dimension_numbers = #tpu.dot_dimension_numbers<[1], [0], [0], [1], [0, 0, 1, 1], [], []>} : vector<8x128xbf16>, vector<128x128xbf16>, vector<8x128xf32> -> vector<8x128xf32>
    %c0_9 = arith.constant 0 : index
    %c384_10 = arith.constant 384 : index
    %20 = vector.load %arg3[%c0_9, %c384_10] : memref<1x640xf32, #tpu.memory_space<vmem>>, vector<1x128xf32>
    %21 = vector.broadcast %20 : vector<1x128xf32> to vector<8x128xf32>
    %22 = arith.addf %19, %21 : vector<8x128xf32>
    %cst_11 = arith.constant 0.000000e+00 : f32
    %23 = vector.broadcast %cst_11 : f32 to vector<8x128xf32>
    %24 = arith.maximumf %22, %23 : vector<8x128xf32>
    %25 = vector.extract_strided_slice %11 {offsets = [0, 128], sizes = [8, 128], strides = [1, 1]} : vector<8x256xf32> to vector<8x128xf32>
    %26 = arith.mulf %24, %25 : vector<8x128xf32>
    %27 = arith.truncf %26 : vector<8x128xf32> to vector<8x128xbf16>
    %c0_12 = arith.constant 0 : index
    %c512 = arith.constant 512 : index
    %28 = vector.load %arg2[%c0_12, %c512] : memref<128x640xbf16, #tpu.memory_space<vmem>>, vector<128x128xbf16>
    %cst_13 = arith.constant dense<0.000000e+00> : vector<8x128xf32>
    %29 = tpu.matmul %27, %28, %cst_13 {dimension_numbers = #tpu.dot_dimension_numbers<[1], [0], [0], [1], [0, 0, 1, 1], [], []>} : vector<8x128xbf16>, vector<128x128xbf16>, vector<8x128xf32> -> vector<8x128xf32>
    %c0_14 = arith.constant 0 : index
    %c512_15 = arith.constant 512 : index
    %30 = vector.load %arg3[%c0_14, %c512_15] : memref<1x640xf32, #tpu.memory_space<vmem>>, vector<1x128xf32>
    %31 = vector.broadcast %30 : vector<1x128xf32> to vector<8x128xf32>
    %32 = arith.addf %29, %31 : vector<8x128xf32>
    %c0_16 = arith.constant 0 : index
    %c0_17 = arith.constant 0 : index
    %33 = vector.load %arg4[%c0_16, %c0_17] : memref<8x128xf32, #tpu.memory_space<vmem>>, vector<8x128xf32>
    tpu.vector_store %arg4[%c0_16, %c0_17], %32 {strides = array<i32>} : memref<8x128xf32, #tpu.memory_space<vmem>>, vector<8x128xf32>,
    return
  }
  func.func @transform_0(%arg0: i32) -> (i32, i32) {
    %c0_i32 = arith.constant 0 : i32
    %c0_i32_0 = arith.constant 0 : i32
    return %arg0, %c0_i32 : i32, i32
  }
  func.func @transform_1(%arg0: i32) -> (i32, i32) {
    %c0_i32 = arith.constant 0 : i32
    %c0_i32_0 = arith.constant 0 : i32
    %c0_i32_1 = arith.constant 0 : i32
    return %c0_i32, %c0_i32_0 : i32, i32
  }
  func.func @transform_2(%arg0: i32) -> (i32, i32) {
    %c0_i32 = arith.constant 0 : i32
    %c0_i32_0 = arith.constant 0 : i32
    %c0_i32_1 = arith.constant 0 : i32
    return %c0_i32, %c0_i32_0 : i32, i32
  }
  func.func @transform_3(%arg0: i32) -> (i32, i32) {
    %c0_i32 = arith.constant 0 : i32
    %c0_i32_0 = arith.constant 0 : i32
    return %arg0, %c0_i32 : i32, i32
  }
}

</mosaic_0001>

<bundles_post_ra>
// kernel: tpu_custom_call.1
= control target key start
LH: loop header
LB: loop body
LE: loop exit
PB: predicated region body
PF: predicated region fallthrough
CT: control target
= control target key end

     0   :  { %8 = vsyncpa [#allocation3], 0  ;;  %s935_s0 = inlined_call_operand.hbm [shape: bf16[8,128], index: 0, kind: input, shape index: {}]   ;;  %s936_s1 = inlined_call_operand.hbm [shape: bf16[128,640], index: 1, kind: input, shape index: {}]   ;;  %s937_s2 = inlined_call_operand.vmem [shape: f32[1,640], index: 2, kind: input, shape index: {}]   ;;  %s938_s3 = inlined_call_operand.hbm [shape: f32[8,128], index: 3, kind: output, shape index: {}]  }
   0x1   :  { %9 = vsyncpa [#allocation6], 0 }
   0x2   :  { %10 = vsyncpa [#allocation4], 0  ;;  %s825_s12 = smov [#allocation2]   ;;  %s826_s14 = smov [#allocation5]  }
   0x3   :  { %s17_s13 = sshll.u32 %s825_s12, 4  ;;  %s26_s15 = sshll.u32 %s826_s14, 4  ;;  %s18_s13 = int_to_ptr.vmem [resolvable:$true] %s17_s13  ;;  %s853_s15 = int_to_ptr.vmem [resolvable:$true] %s26_s15 }
   0x4   :  { %s753_s18 = scalar_lea.hbm %s935_s0, 64 }
   0x5   :  { %p754_p0 = scmp.ne.s32.totalorder %s935_s0, %s753_s18  ;;  %p757_p1 = scmp.lt.u32.totalorder %s753_s18, %s935_s0 }
   0x7   :  { %p759_p2 = pnand %p757_p1, %p754_p0 }
   0x9   :  { %762 = shalt.err (!%p759_p2)
}
   0xa   :  { %s763_s23 = scalar_lea.vmem %s18_s13, 64  ;;  %p768_p4 = scmp.lt.s32.totalorder %s18_s13, %s18_s13 }
   0xb   :  { %p764_p3 = scmp.ne.s32.totalorder %s18_s13, %s763_s23  ;;  %p769_p5 = scmp.lt.s32.totalorder %s763_s23, %s763_s23 }
   0xd   :  { %p770_p6 = por %p769_p5, %p768_p4 }
   0xf   :  { %p771_p7 = pnand %p770_p6, %p764_p3 }
  0x11   :  { %774 = shalt.err (!%p771_p7)
}
  0x12   :  { %20 = dma.hbm_to_vmem [thread:$0]  %s935_s0, 64, %s18_s13, [#allocation3]  }
  0x13   :  { %s775_s28 = scalar_lea.hbm %s936_s1, 5120 }
  0x14   :  { %p776_p8 = scmp.ne.s32.totalorder %s936_s1, %s775_s28  ;;  %p779_p9 = scmp.lt.u32.totalorder %s775_s28, %s936_s1 }
  0x16   :  { %p781_p10 = pnand %p779_p9, %p776_p8 }
  0x18   :  { %784 = shalt.err (!%p781_p10)
}
  0x19   :  { %s785_s6 = scalar_lea.vmem %s853_s15, 5120  ;;  %p790_p12 = scmp.lt.s32.totalorder %s853_s15, %s853_s15 }
  0x1a   :  { %p786_p11 = scmp.ne.s32.totalorder %s853_s15, %s785_s6  ;;  %p791_p13 = scmp.lt.s32.totalorder %s785_s6, %s785_s6 }
  0x1c   :  { %p792_p0 = por %p791_p13, %p790_p12 }
  0x1e   :  { %p793_p1 = pnand %p792_p0, %p786_p11 }
  0x20   :  { %796 = shalt.err (!%p793_p1)
}
  0x21   :  { %s827_s0 = smov 320   ;;  %s828_s7 = smov 20  }
  0x22   :  { %32 = dma.hbm_to_vmem [thread:$0]  %s936_s1, 5120, %s853_s15, [#allocation6], %s827_s0, %s827_s0, %s828_s7  }
  0x23   :  { %819 = dma.done.wait [#allocation3], 64  }
  0x24   :  { %820 = vsyncadd [#allocation3], 4294967232 }
  0x25   :  { %821 = dma.done.wait [#allocation6], 5120  }
  0x26   :  { %822 = vsyncadd [#allocation6], 4294962176  ;;  %v829_v0 = vmov 0.0   ;;  %v830_v1 = vmov 0   ;;  %vm831_vm0 = vmmov 0   ;;  %v77_v41 = vlaneseq  ;;  %s832_s15 = smov [#allocation7]  }
  0x27   :  { %629 = vmatprep.subr.bf16.mxu1 %v829_v0  ;;  %252 = vmatprep.mubr.bf16.mxu0 %v830_v1  ;;  %v697_v2 = vld [vmem:[#allocation5 + $0x4] ss:$20 sps:$4 sm:$0xff]   ;;  %v699_v3 = vld [vmem:[#allocation5] ss:$20 sps:$4 sm:$0xff]   ;;  %v702_v5 = vld [vmem:[#allocation5 + $0x28] ss:$20 sps:$4 sm:$0xff]  }
  0x28   :  { %645 = vmatprep.mubr.msk.bf16.mxu1 %vm831_vm0, %v829_v0  ;;  %220 = vmatprep.subr.bf16.mxu0 %v697_v2  ;;  %v700_v4 = vld [vmem:[#allocation5 + $0x2c] ss:$20 sps:$4 sm:$0xff]   ;;  %v703_v6 = vld [vmem:[#allocation5 + $0x54] ss:$20 sps:$4 sm:$0xff]   ;;  %v705_v7 = vld [vmem:[#allocation5 + $0x50] ss:$20 sps:$4 sm:$0xff]  }
  0x29   :  { %221 = vmatpush1.bf16.msra.mxu0 %v699_v3  ;;  %v706_v8 = vld [vmem:[#allocation5 + $0x7c] ss:$20 sps:$4 sm:$0xff]   ;;  %v708_v10 = vld [vmem:[#allocation5 + $0x78] ss:$20 sps:$4 sm:$0xff]   ;;  %v711_v14 = vld [vmem:[#allocation5 + $0xa0] ss:$20 sps:$4 sm:$0xff]  }
  0x2a   :  { %222 = vmatprep.subr.bf16.mxu0 %v700_v4  ;;  %v715_v9 = vld [vmem:[#allocation5 + $0x8] ss:$20 sps:$4 sm:$0xff]   ;;  %v719_v11 = vld [vmem:[#allocation5 + $0x30] ss:$20 sps:$4 sm:$0xff]   ;;  %v723_v13 = vld [vmem:[#allocation5 + $0x58] ss:$20 sps:$4 sm:$0xff]  }
  0x2b   :  { %630 = vmatpush3.bf16.msra.mxu1 %v715_v9  ;;  %v709_v12 = vld [vmem:[#allocation5 + $0xa4] ss:$20 sps:$4 sm:$0xff]   ;;  %v712_v15 = vld [vmem:[#allocation5 + $0xcc] ss:$20 sps:$4 sm:$0xff]   ;;  %v714_v16 = vld [vmem:[#allocation5 + $0xc8] ss:$20 sps:$4 sm:$0xff]  }
  0x2c   :  { %631 = vmatprep.subr.bf16.mxu1 %v829_v0  ;;  %v724_v17 = vld [vmem:[#allocation5 + $0x80] ss:$20 sps:$4 sm:$0xff]   ;;  %v725_v19 = vld [vmem:[#allocation5 + $0xa8] ss:$20 sps:$4 sm:$0xff]   ;;  %v718_v20 = vld [vmem:[#allocation5 + $0xf0] ss:$20 sps:$4 sm:$0xff]  }
  0x2d   :  { %223 = vmatpush1.bf16.msra.mxu0 %v702_v5  ;;  %v716_v18 = vld [vmem:[#allocation5 + $0xf4] ss:$20 sps:$4 sm:$0xff]   ;;  %v720_v21 = vld [vmem:[#allocation5 + $0x11c] ss:$20 sps:$4 sm:$0xff]   ;;  %v722_v23 = vld [vmem:[#allocation5 + $0x118] ss:$20 sps:$4 sm:$0xff]  }
  0x2e   :  { %224 = vmatprep.subr.bf16.mxu0 %v703_v6  ;;  %v726_v22 = vld [vmem:[#allocation5 + $0xd0] ss:$20 sps:$4 sm:$0xff]   ;;  %v727_v24 = vld [vmem:[#allocation5 + $0xf8] ss:$20 sps:$4 sm:$0xff]   ;;  %v42_v25 = vld [vmem:[#allocation2] sm:$0xf] }
  0x2f   :  { %632 = vmatpush3.bf16.msra.mxu1 %v719_v11  ;;  %v728_v26 = vld [vmem:[#allocation5 + $0x120] ss:$20 sps:$4 sm:$0xff]   ;;  %v731_v29 = vld [vmem:[#allocation5 + $0x5c] ss:$20 sps:$4 sm:$0xff]   ;;  %v732_v30 = vld [vmem:[#allocation5 + $0x84] ss:$20 sps:$4 sm:$0xff]  }
  0x30   :  { %633 = vmatprep.subr.bf16.mxu1 %v829_v0  ;;  %v729_v27 = vld [vmem:[#allocation5 + $0xc] ss:$20 sps:$4 sm:$0xff]   ;;  %v730_v28 = vld [vmem:[#allocation5 + $0x34] ss:$20 sps:$4 sm:$0xff]   ;;  %v735_v33 = vld [vmem:[#allocation5 + $0xfc] ss:$20 sps:$4 sm:$0xff]  }
  0x31   :  { %225 = vmatpush1.bf16.msra.mxu0 %v705_v7  ;;  %v733_v31 = vld [vmem:[#allocation5 + $0xac] ss:$20 sps:$4 sm:$0xff]   ;;  %v734_v32 = vld [vmem:[#allocation5 + $0xd4] ss:$20 sps:$4 sm:$0xff]   ;;  %v736_v34 = vld [vmem:[#allocation5 + $0x124] ss:$20 sps:$4 sm:$0xff]  }
  0x32   :  { %226 = vmatprep.subr.bf16.mxu0 %v706_v8  ;;  %v737_v35 = vld [vmem:[#allocation5 + $0x10] ss:$20 sps:$4 sm:$0xff]   ;;  %v738_v36 = vld [vmem:[#allocation5 + $0x38] ss:$20 sps:$4 sm:$0xff]   ;;  %v739_v37 = vld [vmem:[#allocation5 + $0x60] ss:$20 sps:$4 sm:$0xff]  }
  0x33   :  { %634 = vmatpush3.bf16.msra.mxu1 %v723_v13  ;;  %v740_v38 = vld [vmem:[#allocation5 + $0x88] ss:$20 sps:$4 sm:$0xff]   ;;  %v741_v39 = vld [vmem:[#allocation5 + $0xb0] ss:$20 sps:$4 sm:$0xff]   ;;  %v742_v40 = vld [vmem:[#allocation5 + $0xd8] ss:$20 sps:$4 sm:$0xff]  }
  0x34   :  { %635 = vmatprep.subr.bf16.mxu1 %v829_v0  ;;  %v78_v42 = vshrl.u32 %v77_v41, 7  ;;  %v75_v44 = vld [vmem:[%s937_s2] sm:$0x7]  ;;  %v744_v3 = vld [vmem:[#allocation5 + $0x128] ss:$20 sps:$4 sm:$0xff]   ;;  %s548_s16 = sshll.u32 %s832_s15, 4  ;;  %s549_s16 = int_to_ptr.vmem [resolvable:$true] %s548_s16 }
  0x35   :  { %227 = vmatpush1.bf16.msra.mxu0 %v708_v10  ;;  %v743_v2 = vld [vmem:[#allocation5 + $0x100] ss:$20 sps:$4 sm:$0xff]   ;;  %s797_s17 = scalar_lea.vmem %s549_s16, 128  ;;  %p802_p3 = scmp.lt.s32.totalorder %s549_s16, %s549_s16 }
  0x36   :  { %228 = vmatprep.subr.bf16.mxu0 %v709_v12  ;;  %v79_v43 = vsub.s32 0, %v78_v42  ;;  %v87_v56 = vsub.s32 2, %v78_v42  ;;  %v83_v4 = vsub.s32 1, %v78_v42  ;;  %v584_v10 = vld [vmem:[%s937_s2 + $0x3] ss:$0 sm:$0xff]  ;;  %p798_p2 = scmp.ne.s32.totalorder %s549_s16, %s797_s17  ;;  %p803_p4 = scmp.lt.s32.totalorder %s797_s17, %s797_s17 }
  0x37   :  { %636 = vmatpush3.bf16.msra.mxu1 %v724_v17 }
  0x38   :  { %637 = vmatprep.subr.bf16.mxu1 %v829_v0  ;;  %v80_v45 = vrot.slane %v75_v44, %v79_v43  ;;  %v88_v59 = vrot.slane %v75_v44, %v87_v56  ;;  %v84_v5 = vrot.slane %v75_v44, %v83_v4  ;;  %p804_p5 = por %p803_p4, %p802_p3 }
  0x39   :  { %229 = vmatpush1.bf16.msra.mxu0 %v711_v14 }
  0x3a   :  { %230 = vmatprep.subr.bf16.mxu0 %v712_v15  ;;  %p805_p6 = pnand %p804_p5, %p798_p2 }
  0x3b   :  { %638 = vmatpush3.bf16.msra.mxu1 %v725_v19  ;;  %v593_v19 = vld [vmem:[%s937_s2 + $0x4] ss:$0 sm:$0xff] }
  0x3c   :  { %639 = vmatprep.subr.bf16.mxu1 %v829_v0 }
  0x3d   :  { %231 = vmatpush1.bf16.msra.mxu0 %v714_v16 }
  0x3e   :  { %232 = vmatprep.subr.bf16.mxu0 %v716_v18 }
  0x3f   :  { %640 = vmatpush3.bf16.msra.mxu1 %v726_v22 }
  0x40   :  { %641 = vmatprep.subr.bf16.mxu1 %v829_v0 }
  0x41   :  { %233 = vmatpush1.bf16.msra.mxu0 %v718_v20 }
  0x42   :  { %234 = vmatprep.subr.bf16.mxu0 %v720_v21 }
  0x43   :  { %642 = vmatpush3.bf16.msra.mxu1 %v727_v24 }
  0x44   :  { %643 = vmatprep.subr.bf16.mxu1 %v829_v0 }
  0x45   :  { %235 = vmatpush1.bf16.msra.mxu0 %v722_v23 }
  0x46   :  { %649 = vmatprep.subr.bf16.mxu0 %v829_v0 }
  0x47   :  { %644 = vmatpush3.bf16.msra.mxu1 %v728_v26 }
  0x48   :  { %253 = vmatmul.mubr.bf16.vlgmr.msra.gmra.mrb[0].mxu0 %v42_v25  ;;  %669 = vmatprep.subr.bf16.mxu1 %v829_v0 }
  0x49   :  { %665 = vmatprep.mubr.msk.bf16.mxu0 %vm831_vm0, %v829_v0  ;;  %650 = vmatpush3.bf16.msra.mxu0 %v729_v27 }
  0x4a   :  { %646 = vmatmul.mubr.bf16.vlgmr.msra.gmra.mrb[0].mxu1 %v42_v25  ;;  %651 = vmatprep.subr.bf16.mxu0 %v829_v0 }
  0x4b   :  { %685 = vmatprep.mubr.msk.bf16.mxu1 %vm831_vm0, %v829_v0  ;;  %670 = vmatpush3.bf16.msra.mxu1 %v737_v35 }
  0x4c   :  { %671 = vmatprep.subr.bf16.mxu1 %v829_v0 }
  0x4d   :  { %652 = vmatpush3.bf16.msra.mxu0 %v730_v28 }
  0x4e   :  { %653 = vmatprep.subr.bf16.mxu0 %v829_v0 }
  0x4f   :  { %672 = vmatpush3.bf16.msra.mxu1 %v738_v36 }
  0x50   :  { %673 = vmatprep.subr.bf16.mxu1 %v829_v0 }
  0x51   :  { %654 = vmatpush3.bf16.msra.mxu0 %v731_v29 }
  0x52   :  { %655 = vmatprep.subr.bf16.mxu0 %v829_v0 }
  0x53   :  { %674 = vmatpush3.bf16.msra.mxu1 %v739_v37 }
  0x54   :  { %675 = vmatprep.subr.bf16.mxu1 %v829_v0 }
  0x55   :  { %656 = vmatpush3.bf16.msra.mxu0 %v732_v30 }
  0x56   :  { %657 = vmatprep.subr.bf16.mxu0 %v829_v0 }
  0x57   :  { %676 = vmatpush3.bf16.msra.mxu1 %v740_v38 }
  0x58   :  { %677 = vmatprep.subr.bf16.mxu1 %v829_v0 }
  0x59   :  { %658 = vmatpush3.bf16.msra.mxu0 %v733_v31 }
  0x5a   :  { %659 = vmatprep.subr.bf16.mxu0 %v829_v0 }
  0x5b   :  { %678 = vmatpush3.bf16.msra.mxu1 %v741_v39 }
  0x5c   :  { %679 = vmatprep.subr.bf16.mxu1 %v829_v0 }
  0x5d   :  { %660 = vmatpush3.bf16.msra.mxu0 %v734_v32 }
  0x5e   :  { %661 = vmatprep.subr.bf16.mxu0 %v829_v0 }
  0x5f   :  { %680 = vmatpush3.bf16.msra.mxu1 %v742_v40 }
  0x60   :  { %681 = vmatprep.subr.bf16.mxu1 %v829_v0 }
  0x61   :  { %662 = vmatpush3.bf16.msra.mxu0 %v735_v33 }
  0x62   :  { %663 = vmatprep.subr.bf16.mxu0 %v829_v0 }
  0x63   :  { %682 = vmatpush3.bf16.msra.mxu1 %v743_v2 }
  0x64   :  { %683 = vmatprep.subr.bf16.mxu1 %v829_v0 }
  0x65   :  { %664 = vmatpush3.bf16.msra.mxu0 %v736_v34 }
  0x67   :  { %684 = vmatpush3.bf16.msra.mxu1 %v744_v3 }
 0x11b   :  { %v254_v46 = vpop.f32.mrb[0].mxu0 }
 0x11c   :  { %v255_v47 = vadd.f32 %v254_v46, %v80_v45  ;;  %v256_v48 = vpop.f32.mrb[1].mxu0 }
 0x11d   :  { %v258_v49 = vpop.f32.mrb[2].mxu0  ;;  %v295_v52 = vpop.f32.mrb[0].mxu1  ;;  %v257_v6 = vadd.f32 %v256_v48, %v84_v5 }
 0x11e   :  { %v582_v50 = vmul.f32 -1.442695, %v255_v47  ;;  %v259_v51 = vpop.f32.mrb[3].mxu0  ;;  %v647_v53 = vpop.f32.mrb[1].mxu1  ;;  %v296_v60 = vadd.f32 %v295_v52, %v88_v59 }
 0x11f   :  { %v298_v54 = vpop.f32.mrb[2].mxu1  ;;  %v583_v7 = vmul.f32 -1.442695, %v257_v6 }
 0x120   :  { %745 = vpow2.f32 %v582_v50  ;;  %v648_v55 = vpop.f32.mrb[3].mxu1  ;;  %v313_v61 = vmax.f32 %v296_v60, 0.0 }
 0x12a   :  { %v746_v57 = vpop.eup %745 }
 0x12b   :  { %v307_v58 = vadd.f32 1.0, %v746_v57 }
 0x12d   :  { %747 = vrcp.f32 %v307_v58 }
 0x12e   :  { %749 = vpow2.f32 %v583_v7 }
 0x137   :  { %v748_v62 = vpop.eup %747 }
 0x138   :  { %v314_v63 = vmul.f32 %v748_v62, %v313_v61  ;;  %v750_v8 = vpop.eup %749 }
 0x139   :  { %v308_v9 = vadd.f32 1.0, %v750_v8 }
 0x13a   :  { %v315_v1 = vpack.c.bf16 %v314_v63, %v314_v63 }
 0x13b   :  { %751 = vrcp.f32 %v308_v9 }
 0x13c   :  { %666 = vmatmul.mubr.bf16.vlgmr.msra.gmra.mrb[4].mxu0 %v315_v1 }
 0x145   :  { %v752_v16 = vpop.eup %751 }
 0x20f   :  { %v421_v11 = vpop.f32.mrb[4].mxu0 }
 0x210   :  { %v422_v12 = vadd.f32 %v584_v10, %v421_v11  ;;  %v667_v13 = vpop.f32.mrb[5].mxu0 }
 0x211   :  { %v424_v14 = vpop.f32.mrb[6].mxu0 }
 0x212   :  { %v427_v15 = vmax.f32 %v422_v12, 0.0  ;;  %v668_v0 = vpop.f32.mrb[7].mxu0 }
 0x214   :  { %v428_v17 = vmul.f32 %v752_v16, %v427_v15 }
 0x216   :  { %v429_v18 = vpack.c.bf16 %v428_v17, %v428_v17 }
 0x218   :  { %686 = vmatmul.mubr.bf16.vlgmr.msra.gmra.mrb[4].mxu1 %v429_v18 }
 0x2eb   :  { %v535_v20 = vpop.f32.mrb[4].mxu1 }
 0x2ec   :  { %v536_v21 = vadd.f32 %v593_v19, %v535_v20  ;;  %v687_v22 = vpop.f32.mrb[5].mxu1 }
 0x2ed   :  { %v538_v23 = vpop.f32.mrb[6].mxu1 }
 0x2ee   :  { %541 = vst [vmem:[#allocation7] sm:$0xff] %v536_v21  ;;  %v688_v24 = vpop.f32.mrb[7].mxu1 }
 0x2ef   :  { %808 = shalt.err (!%p805_p6)
}
 0x2f0   :  { %s809_s2 = scalar_lea.hbm %s938_s3, 128 }
 0x2f1   :  { %p810_p7 = scmp.ne.s32.totalorder %s938_s3, %s809_s2  ;;  %p813_p8 = scmp.lt.u32.totalorder %s809_s2, %s938_s3 }
 0x2f3   :  { %p815_p9 = pnand %p813_p8, %p810_p7 }
 0x2f5   :  { %818 = shalt.err (!%p815_p9)
}
 0x2f6   :  { %551 = dma.vmem_to_hbm [thread:$0]  %s549_s16, 128, %s938_s3, [#allocation4]  }
 0x2f7   :  { %823 = dma.done.wait [#allocation4], 128  }
 0x2f8   :  { %824 = vsyncadd [#allocation4], 4294967168 }
 0x2f9   :  { %555 = vsyncpa [#allocation3], 1 }
 0x2fa   :  { %556 = vsyncpa [#allocation6], 1 }
 0x2fb   :  { %557 = vsyncpa [#allocation4], 1 }

</bundles_post_ra>
